<compile_context>
chip_gen: v6e
topology: v6e:2x2x1
jax: 0.10.0
libtpu: 0.0.40
codegen_flags: <defaults>
</compile_context>

<pallas_src>
import functools

import jax
import jax.numpy as jnp
import numpy as np
from jax import lax
from jax.experimental import pallas as pl
from jax.experimental.pallas import tpu as pltpu

CLIP_DIM = 768
NUM_CLASSES = 3


# ---------------------------------------------------------------------------
# Kernel
# ---------------------------------------------------------------------------
def _forward_kernel(x_ref, w_ref, b_ref, scale_ref, logits_ref):
    """norm -> relu -> fc -> * exp(logit_scale), logits only.

    x_ref:     [tb, D]   features (f32 or bf16)
    w_ref:     [D, C]    fc weight (same dtype as features, MXU input)
    b_ref:     [1, C]    fc bias * exp(logit_scale), f32
    scale_ref: [1]       exp(logit_scale), f32, SMEM
    """
    x = x_ref[...]                                            # [tb, D]
    xf = x.astype(jnp.float32)
    inv_norm = lax.rsqrt(jnp.sum(xf * xf, axis=-1, keepdims=True))   # [tb, 1] f32
    h = jnp.maximum(x, 0).astype(x.dtype)                     # relu, MXU fed in input dtype
    logits = jnp.dot(h, w_ref[...], preferred_element_type=jnp.float32)  # [tb, C] f32
    # (relu(x) @ W) * exp(s)/||x||  +  b*exp(s)   ==   (fc(relu(x/||x||))) * exp(s)
    logits_ref[...] = (logits * (inv_norm * scale_ref[0])
                       + b_ref[...]).astype(logits_ref.dtype)


# ---------------------------------------------------------------------------
# Tiling helpers
# ---------------------------------------------------------------------------
def _tile_rows(b, tile_b, row_mult):
    """Pick the block row count.

    - full batch if it fits in one sublane-packing multiple,
    - otherwise a multiple of `row_mult` (16 for bf16, 8 for f32), capped so the
      grid has at least 2 steps (v7x megacore sharding of the batch axis).
    """
    if b <= row_mult:
        return b                                   # block dims == array dims
    half = ((pl.cdiv(b, 2) + row_mult - 1) // row_mult) * row_mult
    tb = min(int(tile_b), half)
    tb = max(row_mult, (tb // row_mult) * row_mult)
    return tb


def _vmem_limit_bytes(tb, d, in_itemsize):
    """Scoped-VMEM request: double-buffered input + f32 temporaries + headroom.

    Clamped to [16 MiB, 64 MiB]: 16 MiB matches v5e's scoped default; 64 MiB is
    v7x's physical per-TC VMEM, so the request is always honorable.
    """
    need = 2 * tb * d * in_itemsize + 3 * tb * d * 4 + (4 << 20)
    return int(min(64 << 20, max(16 << 20, need)))


def _cost(b, d, in_itemsize, w_itemsize):
    return pl.CostEstimate(
        flops=2 * b * d * NUM_CLASSES,
        transcendentals=b,                                     # rsqrt per row
        bytes_accessed=(b * d * in_itemsize                    # features
                        + d * NUM_CLASSES * w_itemsize         # weight
                        + NUM_CLASSES * 4 + 4                  # bias + scale
                        + b * NUM_CLASSES * 4),                # logits out
    )


def _logits_pallas(x, w, b_scaled, scale, *, tile_b):
    """Pallas call producing f32 logits [B, NUM_CLASSES]."""
    b, d = x.shape
    itemsize = jnp.dtype(x.dtype).itemsize
    row_mult = 16 if itemsize < 4 else 8
    tb = _tile_rows(b, tile_b, row_mult)
    grid = (pl.cdiv(b, tb),)
    return pl.pallas_call(
        _forward_kernel,
        grid=grid,
        in_specs=[
            # If profiling shows exposed input DMA gaps, add
            # pipeline_mode=pl.Buffered(3) on this spec and sweep 2 vs 3.
            pl.BlockSpec((tb, d), lambda i: (i, 0)),                   # features tile
            pl.BlockSpec((d, NUM_CLASSES), lambda i: (0, 0)),          # fc weight
            pl.BlockSpec((1, NUM_CLASSES), lambda i: (0, 0)),          # fc bias * exp(s)
            pl.BlockSpec(memory_space=pltpu.MemorySpace.SMEM),         # exp(logit_scale)
        ],
        out_specs=pl.BlockSpec((tb, NUM_CLASSES), lambda i: (i, 0)),
        out_shape=jax.ShapeDtypeStruct((b, NUM_CLASSES), jnp.float32),
        compiler_params=pltpu.CompilerParams(
            dimension_semantics=("parallel",),
            vmem_limit_bytes=_vmem_limit_bytes(tb, d, itemsize),
        ),
        cost_estimate=_cost(b, d, itemsize, jnp.dtype(w.dtype).itemsize),
    )(x, w, b_scaled, scale)


# ---------------------------------------------------------------------------
# Wrapper (mirrors ClipClassifier.forward)
# ---------------------------------------------------------------------------
@functools.partial(jax.jit, static_argnames=("tile_b", "compute_dtype"))
def clip_classifier(vis_feats, fc_w, fc_b, logit_scale, labels=None, *,
                    tile_b=2048, compute_dtype=jnp.bfloat16):
    """Returns (logits,) or (loss, logits), matching the PyTorch module.

    The kernel is HBM-bandwidth bound, so features/weights default to bf16
    (halves read traffic); pass compute_dtype=jnp.float32 for exact f32.
    """
    b = vis_feats.shape[0]
    x = vis_feats.astype(compute_dtype)
    w = fc_w.astype(compute_dtype)                             # MXU fed in feature dtype
    scale = jnp.exp(logit_scale.reshape(-1)[:1].astype(jnp.float32))    # [1] = exp(s)
    b_scaled = fc_b.reshape(1, NUM_CLASSES).astype(jnp.float32) * scale  # [1, C]

    logits = _logits_pallas(x, w, b_scaled, scale, tile_b=tile_b)

    if labels is None:
        return (logits,)
    # Cross-entropy on the [B, 3] logits is ~free in XLA; keeping it out of the
    # kernel removes the narrow labels-read / loss-write DMAs per grid step.
    logp = jax.nn.log_softmax(logits, axis=-1)
    picked = jnp.take_along_axis(logp, labels.reshape(-1, 1).astype(jnp.int32),
                                 axis=-1)
    loss = -jnp.mean(picked)
    return (loss, logits)


# ---------------------------------------------------------------------------
# Params + pure-JAX reference
# ---------------------------------------------------------------------------
def init_params(key):
    kw, kb = jax.random.split(key)
    # nn.Linear(768, 3): weight [3, 768], bias [3]; stored transposed as [768, 3].
    bound = 1.0 / np.sqrt(CLIP_DIM)
    fc_w = jax.random.uniform(kw, (CLIP_DIM, NUM_CLASSES), jnp.float32,
                              -bound, bound)
    fc_b = jax.random.uniform(kb, (1, NUM_CLASSES), jnp.float32, -bound, bound)
    logit_scale = jnp.array([np.log(1.0 / 0.07)], dtype=jnp.float32)
    return fc_w, fc_b, logit_scale


def _reference(vis_feats, fc_w, fc_b, logit_scale, labels=None):
    x = vis_feats / jnp.linalg.norm(vis_feats, axis=-1, keepdims=True)
    logits = jnp.maximum(x, 0.0) @ fc_w + fc_b.reshape(1, -1)
    logits = logits * jnp.exp(logit_scale.reshape(-1)[0])
    if labels is None:
        return logits
    logp = jax.nn.log_softmax(logits, axis=-1)
    loss = -jnp.mean(jnp.take_along_axis(logp, labels[:, None], axis=-1))
    return loss, logits


# ---------------------------------------------------------------------------
# Self-test
# ---------------------------------------------------------------------------
if __name__ == "__main__":
    key = jax.random.PRNGKey(0)
    k_feat, k_lab, k_param, k_feat2, k_lab2 = jax.random.split(key, 5)

    fc_w, fc_b, logit_scale = init_params(k_param)

    # --- Case 1: B=8, exact f32 path, logits-only and loss --------------------
    B = 8
    vis = jax.random.normal(k_feat, (B, CLIP_DIM), jnp.float32)
    labels = jax.random.randint(k_lab, (B,), 0, NUM_CLASSES, jnp.int32)

    loss, logits = clip_classifier(vis, fc_w, fc_b, logit_scale, labels,
                                   compute_dtype=jnp.float32)
    (logits_only,) = clip_classifier(vis, fc_w, fc_b, logit_scale,
                                     compute_dtype=jnp.float32)
    jax.block_until_ready((loss, logits, logits_only))

    ref_loss, ref_logits = _reference(vis, fc_w, fc_b, logit_scale, labels)
    np.testing.assert_allclose(np.asarray(logits), np.asarray(ref_logits),
                               rtol=1e-5, atol=1e-5)
    np.testing.assert_allclose(np.asarray(logits_only), np.asarray(ref_logits),
                               rtol=1e-5, atol=1e-5)
    np.testing.assert_allclose(float(loss), float(ref_loss), rtol=1e-5, atol=1e-5)

    # --- Case 2: B=20 with tile_b=16 -> 2 grid steps, ragged last tile (f32) --
    B2 = 20
    vis2 = jax.random.normal(k_feat2, (B2, CLIP_DIM), jnp.float32)
    labels2 = jax.random.randint(k_lab2, (B2,), 0, NUM_CLASSES, jnp.int32)
    loss2, logits2 = clip_classifier(vis2, fc_w, fc_b, logit_scale, labels2,
                                     tile_b=16, compute_dtype=jnp.float32)
    jax.block_until_ready((loss2, logits2))
    ref_loss2, ref_logits2 = _reference(vis2, fc_w, fc_b, logit_scale, labels2)
    np.testing.assert_allclose(np.asarray(logits2), np.asarray(ref_logits2),
                               rtol=1e-5, atol=1e-5)
    np.testing.assert_allclose(float(loss2), float(ref_loss2),
                               rtol=1e-5, atol=1e-5)

    # --- Case 3: default bf16 fast path (halved HBM read traffic) -------------
    (logits_bf,) = clip_classifier(vis, fc_w, fc_b, logit_scale)
    jax.block_until_ready(logits_bf)
    ref_bf = _reference(vis.astype(jnp.bfloat16).astype(jnp.float32),
                        fc_w.astype(jnp.bfloat16).astype(jnp.float32),
                        fc_b, logit_scale)
    np.testing.assert_allclose(np.asarray(logits_bf), np.asarray(ref_bf),
                               rtol=2e-2, atol=2e-2)

    loss_bf, _ = clip_classifier(vis, fc_w, fc_b, logit_scale, labels)
    jax.block_until_ready(loss_bf)
    np.testing.assert_allclose(float(loss_bf), float(ref_loss),
                               rtol=5e-2, atol=5e-2)

    print("KERNEL_OK")
</pallas_src>

<mosaic_0001>
module attributes {stable_mosaic.version = 11 : i64} {
  func.func @_forward_kernel(%arg0: i32, %arg1: memref<8x768xf32, #tpu.memory_space<vmem>>, %arg2: memref<768x3xf32, #tpu.memory_space<vmem>>, %arg3: memref<1x3xf32, #tpu.memory_space<vmem>>, %arg4: memref<1xf32, #tpu.memory_space<smem>>, %arg5: memref<8x3xf32, #tpu.memory_space<vmem>>) attributes {dimension_semantics = [#tpu.dimension_semantics<parallel>], iteration_bounds = array<i64: 1>, scalar_prefetch = 0 : i64, scratch_operands = 0 : i64, tpu.core_type = #tpu.core_type<tc>, window_params = [{transform_indices = @transform_0, window_bounds = array<i64: 8, 768>}, {pipeline_mode = #tpu.pipeline_mode<synchronous>, transform_indices = @transform_1, window_bounds = array<i64: 768, 3>}, {pipeline_mode = #tpu.pipeline_mode<synchronous>, transform_indices = @transform_2, window_bounds = array<i64: 1, 3>}, {transform_indices = @transform_3, window_bounds = array<i64: 1>}, {transform_indices = @transform_4, window_bounds = array<i64: 8, 3>}]} {
    %c0 = arith.constant 0 : index
    %c0_0 = arith.constant 0 : index
    %0 = vector.load %arg1[%c0, %c0_0] : memref<8x768xf32, #tpu.memory_space<vmem>>, vector<8x768xf32>
    %1 = arith.mulf %0, %0 : vector<8x768xf32>
    %cst = arith.constant dense<0.000000e+00> : vector<8xf32>
    %2 = vector.multi_reduction <add>, %1, %cst [1] : vector<8x768xf32> to vector<8xf32>
    %3 = vector.shape_cast %2 : vector<8xf32> to vector<8x1xf32>
    %4 = math.rsqrt %3 : vector<8x1xf32>
    %cst_1 = arith.constant 0.000000e+00 : f32
    %5 = vector.broadcast %cst_1 : f32 to vector<8x768xf32>
    %6 = arith.maximumf %0, %5 : vector<8x768xf32>
    %c0_2 = arith.constant 0 : index
    %c0_3 = arith.constant 0 : index
    %7 = vector.load %arg2[%c0_2, %c0_3] : memref<768x3xf32, #tpu.memory_space<vmem>>, vector<768x3xf32>
    %cst_4 = arith.constant dense<0.000000e+00> : vector<8x3xf32>
    %8 = tpu.matmul %6, %7, %cst_4 {dimension_numbers = #tpu.dot_dimension_numbers<[1], [0], [0], [1], [0, 0, 1, 1], [], []>} : vector<8x768xf32>, vector<768x3xf32>, vector<8x3xf32> -> vector<8x3xf32>
    %c0_5 = arith.constant 0 : index
    %9 = memref.load %arg4[%c0_5] : memref<1xf32, #tpu.memory_space<smem>>
    %10 = vector.broadcast %9 : f32 to vector<8x1xf32>
    %11 = arith.mulf %4, %10 : vector<8x1xf32>
    %12 = vector.broadcast %11 : vector<8x1xf32> to vector<8x3xf32>
    %13 = arith.mulf %8, %12 : vector<8x3xf32>
    %c0_6 = arith.constant 0 : index
    %c0_7 = arith.constant 0 : index
    %14 = vector.load %arg3[%c0_6, %c0_7] : memref<1x3xf32, #tpu.memory_space<vmem>>, vector<1x3xf32>
    %15 = vector.broadcast %14 : vector<1x3xf32> to vector<8x3xf32>
    %16 = arith.addf %13, %15 : vector<8x3xf32>
    %c0_8 = arith.constant 0 : index
    %c0_9 = arith.constant 0 : index
    %17 = vector.load %arg5[%c0_8, %c0_9] : memref<8x3xf32, #tpu.memory_space<vmem>>, vector<8x3xf32>
    tpu.vector_store %arg5[%c0_8, %c0_9], %16 {strides = array<i32>} : memref<8x3xf32, #tpu.memory_space<vmem>>, vector<8x3xf32>,
    return
  }
  func.func @transform_0(%arg0: i32) -> (i32, i32) {
    %c0_i32 = arith.constant 0 : i32
    %c0_i32_0 = arith.constant 0 : i32
    return %arg0, %c0_i32 : i32, i32
  }
  func.func @transform_1(%arg0: i32) -> (i32, i32) {
    %c0_i32 = arith.constant 0 : i32
    %c0_i32_0 = arith.constant 0 : i32
    %c0_i32_1 = arith.constant 0 : i32
    return %c0_i32, %c0_i32_0 : i32, i32
  }
  func.func @transform_2(%arg0: i32) -> (i32, i32) {
    %c0_i32 = arith.constant 0 : i32
    %c0_i32_0 = arith.constant 0 : i32
    %c0_i32_1 = arith.constant 0 : i32
    return %c0_i32, %c0_i32_0 : i32, i32
  }
  func.func @transform_3(%arg0: i32) -> i32 {
    %c0_i32 = arith.constant 0 : i32
    %c0_i32_0 = arith.constant 0 : i32
    return %c0_i32 : i32
  }
  func.func @transform_4(%arg0: i32) -> (i32, i32) {
    %c0_i32 = arith.constant 0 : i32
    %c0_i32_0 = arith.constant 0 : i32
    return %arg0, %c0_i32 : i32, i32
  }
}

</mosaic_0001>

<bundles_post_ra>
// kernel: clip_classifier.1
= control target key start
LH: loop header
LB: loop body
LE: loop exit
PB: predicated region body
PF: predicated region fallthrough
CT: control target
= control target key end

     0   :  { %vm362_vm0 = vcmask 23552   ;;  %s821_s1 = inlined_call_operand.vmem [shape: f32[768,3], index: 1, kind: input, shape index: {}]   ;;  %s822_s0 = inlined_call_operand.vmem [shape: f32[8,768], index: 0, kind: input, shape index: {}]   ;;  %s823_s3 = inlined_call_operand.<no memory space> [shape: f32[1], index: 3, kind: input, shape index: {}]   ;;  %s824_s2 = inlined_call_operand.vmem [shape: f32[1,3], index: 2, kind: input, shape index: {}]   ;;  %s825_s4 = inlined_call_operand.vmem [shape: f32[8,3], index: 4, kind: output, shape index: {}]  }
   0x1   :  { %v75_v0 = vld [vmem:[%s821_s1 + $0xf8] sm:$0xff]  ;;  %v74_v4 = vld [vmem:[%s821_s1 + $0xf0] sm:$0xff]  ;;  %v73_v8 = vld [vmem:[%s821_s1 + $0xe8] sm:$0xff] }
   0x2   :  { %v107_v1 = vld [vmem:[%s821_s1 + $0x1f8] sm:$0xff]  ;;  %369 = vmatprep.subr.mxu0 %v75_v0  ;;  %v106_v5 = vld [vmem:[%s821_s1 + $0x1f0] sm:$0xff]  ;;  %v105_v9 = vld [vmem:[%s821_s1 + $0x1e8] sm:$0xff] }
   0x3   :  { %v59_v2 = vld [vmem:[%s821_s1 + $0x78] sm:$0xff]  ;;  %404 = vmatprep.subr.mxu1 %v107_v1  ;;  %v58_v6 = vld [vmem:[%s821_s1 + $0x70] sm:$0xff]  ;;  %v57_v10 = vld [vmem:[%s821_s1 + $0x68] sm:$0xff] }
   0x4   :  { %v91_v3 = vld [vmem:[%s821_s1 + $0x178] sm:$0xff]  ;;  %370 = vmatpush3.msra.mxu0 %v59_v2  ;;  %v90_v7 = vld [vmem:[%s821_s1 + $0x170] sm:$0xff]  ;;  %v89_v11 = vld [vmem:[%s821_s1 + $0x168] sm:$0xff] }
   0x5   :  { %405 = vmatpush3.msra.mxu1 %v91_v3  ;;  %371 = vmatprep.subr.mxu0 %v74_v4  ;;  %v72_v12 = vld [vmem:[%s821_s1 + $0xe0] sm:$0xff]  ;;  %v71_v16 = vld [vmem:[%s821_s1 + $0xd8] sm:$0xff]  ;;  %v70_v20 = vld [vmem:[%s821_s1 + $0xd0] sm:$0xff] }
   0x6   :  { %406 = vmatprep.subr.mxu1 %v106_v5  ;;  %372 = vmatpush3.msra.mxu0 %v58_v6  ;;  %v104_v13 = vld [vmem:[%s821_s1 + $0x1e0] sm:$0xff]  ;;  %v103_v17 = vld [vmem:[%s821_s1 + $0x1d8] sm:$0xff]  ;;  %v102_v21 = vld [vmem:[%s821_s1 + $0x1d0] sm:$0xff] }
   0x7   :  { %407 = vmatpush3.msra.mxu1 %v90_v7  ;;  %373 = vmatprep.subr.mxu0 %v73_v8  ;;  %v56_v14 = vld [vmem:[%s821_s1 + $0x60] sm:$0xff]  ;;  %v55_v18 = vld [vmem:[%s821_s1 + $0x58] sm:$0xff]  ;;  %v54_v22 = vld [vmem:[%s821_s1 + $0x50] sm:$0xff] }
   0x8   :  { %408 = vmatprep.subr.mxu1 %v105_v9  ;;  %v88_v15 = vld [vmem:[%s821_s1 + $0x160] sm:$0xff]  ;;  %374 = vmatpush3.msra.mxu0 %v57_v10  ;;  %v87_v19 = vld [vmem:[%s821_s1 + $0x158] sm:$0xff]  ;;  %v86_v23 = vld [vmem:[%s821_s1 + $0x150] sm:$0xff] }
   0x9   :  { %409 = vmatpush3.msra.mxu1 %v89_v11  ;;  %375 = vmatprep.subr.mxu0 %v72_v12  ;;  %v69_v24 = vld [vmem:[%s821_s1 + $0xc8] sm:$0xff]  ;;  %v68_v28 = vld [vmem:[%s821_s1 + $0xc0] sm:$0xff]  ;;  %v67_v32 = vld [vmem:[%s821_s1 + $0xb8] sm:$0xff] }
   0xa   :  { %410 = vmatprep.subr.mxu1 %v104_v13  ;;  %376 = vmatpush3.msra.mxu0 %v56_v14  ;;  %v101_v25 = vld [vmem:[%s821_s1 + $0x1c8] sm:$0xff]  ;;  %v100_v29 = vld [vmem:[%s821_s1 + $0x1c0] sm:$0xff]  ;;  %v99_v33 = vld [vmem:[%s821_s1 + $0x1b8] sm:$0xff] }
   0xb   :  { %411 = vmatpush3.msra.mxu1 %v88_v15  ;;  %377 = vmatprep.subr.mxu0 %v71_v16  ;;  %v53_v26 = vld [vmem:[%s821_s1 + $0x48] sm:$0xff]  ;;  %v52_v30 = vld [vmem:[%s821_s1 + $0x40] sm:$0xff]  ;;  %v51_v34 = vld [vmem:[%s821_s1 + $0x38] sm:$0xff] }
   0xc   :  { %412 = vmatprep.subr.mxu1 %v103_v17  ;;  %378 = vmatpush3.msra.mxu0 %v55_v18  ;;  %v85_v27 = vld [vmem:[%s821_s1 + $0x148] sm:$0xff]  ;;  %v84_v31 = vld [vmem:[%s821_s1 + $0x140] sm:$0xff]  ;;  %v83_v35 = vld [vmem:[%s821_s1 + $0x138] sm:$0xff] }
   0xd   :  { %413 = vmatpush3.msra.mxu1 %v87_v19  ;;  %379 = vmatprep.subr.mxu0 %v70_v20  ;;  %v66_v36 = vld [vmem:[%s821_s1 + $0xb0] sm:$0xff]  ;;  %v65_v40 = vld [vmem:[%s821_s1 + $0xa8] sm:$0xff]  ;;  %v64_v44 = vld [vmem:[%s821_s1 + $0xa0] sm:$0xff] }
   0xe   :  { %414 = vmatprep.subr.mxu1 %v102_v21  ;;  %380 = vmatpush3.msra.mxu0 %v54_v22  ;;  %v98_v37 = vld [vmem:[%s821_s1 + $0x1b0] sm:$0xff]  ;;  %v97_v41 = vld [vmem:[%s821_s1 + $0x1a8] sm:$0xff]  ;;  %v96_v45 = vld [vmem:[%s821_s1 + $0x1a0] sm:$0xff] }
   0xf   :  { %415 = vmatpush3.msra.mxu1 %v86_v23  ;;  %381 = vmatprep.subr.mxu0 %v69_v24  ;;  %v50_v38 = vld [vmem:[%s821_s1 + $0x30] sm:$0xff]  ;;  %v49_v42 = vld [vmem:[%s821_s1 + $0x28] sm:$0xff]  ;;  %v48_v46 = vld [vmem:[%s821_s1 + $0x20] sm:$0xff] }
  0x10   :  { %416 = vmatprep.subr.mxu1 %v101_v25  ;;  %382 = vmatpush3.msra.mxu0 %v53_v26  ;;  %v82_v39 = vld [vmem:[%s821_s1 + $0x130] sm:$0xff]  ;;  %v81_v43 = vld [vmem:[%s821_s1 + $0x128] sm:$0xff]  ;;  %v80_v47 = vld [vmem:[%s821_s1 + $0x120] sm:$0xff] }
  0x11   :  { %417 = vmatpush3.msra.mxu1 %v85_v27  ;;  %383 = vmatprep.subr.mxu0 %v68_v28  ;;  %v18_v48 = vld [vmem:[%s822_s0] sm:$0xff]  ;;  %v19_v49 = vld [vmem:[%s822_s0 + $0x8] sm:$0xff]  ;;  %v63_v50 = vld [vmem:[%s821_s1 + $0x98] sm:$0xff] }
  0x12   :  { %418 = vmatprep.subr.mxu1 %v100_v29  ;;  %384 = vmatpush3.msra.mxu0 %v52_v30  ;;  %v95_v51 = vld [vmem:[%s821_s1 + $0x198] sm:$0xff]  ;;  %v24_v52 = vmul.f32 %v18_v48, %v18_v48  ;;  %v25_v53 = vmul.f32 %v19_v49, %v19_v49  ;;  %v20_v56 = vld [vmem:[%s822_s0 + $0x10] sm:$0xff]  ;;  %v61_v63 = vld [vmem:[%s821_s1 + $0x88] sm:$0xff]  ;;  %v39_v6 = vmax.f32 %v19_v49, 0.0  ;;  %v38_v12 = vmax.f32 %v18_v48, 0.0 }
  0x13   :  { %419 = vmatpush3.msra.mxu1 %v84_v31  ;;  %385 = vmatprep.subr.mxu0 %v67_v32  ;;  %v47_v54 = vld [vmem:[%s821_s1 + $0x18] sm:$0xff]  ;;  %v62_v57 = vld [vmem:[%s821_s1 + $0x90] sm:$0xff]  ;;  %v26_v60 = vmul.f32 %v20_v56, %v20_v56  ;;  %v93_v0 = vld [vmem:[%s821_s1 + $0x188] sm:$0xff]  ;;  %v40_v13 = vmax.f32 %v20_v56, 0.0 }
  0x14   :  { %420 = vmatprep.subr.mxu1 %v99_v33  ;;  %386 = vmatpush3.msra.mxu0 %v51_v34  ;;  %v79_v55 = vld [vmem:[%s821_s1 + $0x118] sm:$0xff]  ;;  %v94_v58 = vld [vmem:[%s821_s1 + $0x190] sm:$0xff]  ;;  %v30_v59 = vadd.f32 %v25_v53, %v24_v52  ;;  %v45_v2 = vld [vmem:[%s821_s1 + $0x8] sm:$0xff] }
  0x15   :  { %421 = vmatpush3.msra.mxu1 %v83_v35  ;;  %387 = vmatprep.subr.mxu0 %v66_v36  ;;  %v46_v61 = vld [vmem:[%s821_s1 + $0x10] sm:$0xff]  ;;  %v21_v1 = vld [vmem:[%s822_s0 + $0x18] sm:$0xff]  ;;  %v77_v3 = vld [vmem:[%s821_s1 + $0x108] sm:$0xff] }
  0x16   :  { %422 = vmatprep.subr.mxu1 %v98_v37  ;;  %388 = vmatpush3.msra.mxu0 %v50_v38  ;;  %v78_v62 = vld [vmem:[%s821_s1 + $0x110] sm:$0xff]  ;;  %v60_v4 = vld [vmem:[%s821_s1 + $0x80] sm:$0xff]  ;;  %v27_v7 = vmul.f32 %v21_v1, %v21_v1  ;;  %v31_v8 = vadd.f32 %v30_v59, %v26_v60  ;;  %v41_v10 = vmax.f32 %v21_v1, 0.0  ;;  %v139_v14 = vld [vmem:[%s821_s1 + $0x2f8] sm:$0xff] }
  0x17   :  { %423 = vmatpush3.msra.mxu1 %v82_v39  ;;  %389 = vmatprep.subr.mxu0 %v65_v40  ;;  %v92_v5 = vld [vmem:[%s821_s1 + $0x180] sm:$0xff]  ;;  %v123_v16 = vld [vmem:[%s821_s1 + $0x278] sm:$0xff]  ;;  %v23_v17 = vld [vmem:[%s822_s0 + $0x28] sm:$0xff] }
  0x18   :  { %424 = vmatprep.subr.mxu1 %v97_v41  ;;  %390 = vmatpush3.msra.mxu0 %v49_v42  ;;  %v44_v9 = vld [vmem:[%s821_s1] sm:$0xff]  ;;  %v32_v15 = vadd.f32 %v31_v8, %v27_v7  ;;  %v138_v19 = vld [vmem:[%s821_s1 + $0x2f0] sm:$0xff]  ;;  %v43_v20 = vmax.f32 %v23_v17, 0.0  ;;  %v29_v22 = vmul.f32 %v23_v17, %v23_v17  ;;  %v137_v24 = vld [vmem:[%s821_s1 + $0x2e8] sm:$0xff] }
  0x19   :  { %425 = vmatpush3.msra.mxu1 %v81_v43  ;;  %391 = vmatprep.subr.mxu0 %v64_v44  ;;  %v76_v11 = vld [vmem:[%s821_s1 + $0x100] sm:$0xff]  ;;  %v122_v23 = vld [vmem:[%s821_s1 + $0x270] sm:$0xff]  ;;  %v121_v26 = vld [vmem:[%s821_s1 + $0x268] sm:$0xff] }
  0x1a   :  { %426 = vmatprep.subr.mxu1 %v96_v45  ;;  %392 = vmatpush3.msra.mxu0 %v48_v46  ;;  %v717_v18 = vld [vmem:[%s822_s0 + $0x20] sm:$0xff]  ;;  %v135_v30 = vld [vmem:[%s821_s1 + $0x2d8] sm:$0xff]  ;;  %v134_v32 = vld [vmem:[%s821_s1 + $0x2d0] sm:$0xff] }
  0x1b   :  { %427 = vmatpush3.msra.mxu1 %v80_v47  ;;  %393 = vmatprep.subr.mxu0 %v63_v50  ;;  %v28_v21 = vmul.f32 %v717_v18, %v717_v18  ;;  %v136_v27 = vld [vmem:[%s821_s1 + $0x2e0] sm:$0xff]  ;;  %v119_v31 = vld [vmem:[%s821_s1 + $0x258] sm:$0xff]  ;;  %v118_v33 = vld [vmem:[%s821_s1 + $0x250] sm:$0xff] }
  0x1c   :  { %428 = vmatprep.subr.mxu1 %v95_v51  ;;  %394 = vmatpush3.msra.mxu0 %v47_v54  ;;  %v120_v29 = vld [vmem:[%s821_s1 + $0x260] sm:$0xff]  ;;  %v133_v34 = vld [vmem:[%s821_s1 + $0x2c8] sm:$0xff]  ;;  %v131_v38 = vld [vmem:[%s821_s1 + $0x2b8] sm:$0xff]  ;;  %v42_v54 = vmax.f32 %v717_v18, 0.0 }
  0x1d   :  { %429 = vmatpush3.msra.mxu1 %v79_v55  ;;  %395 = vmatprep.subr.mxu0 %v62_v57  ;;  %v33_v25 = vadd.f32 %v32_v15, %v28_v21  ;;  %v117_v35 = vld [vmem:[%s821_s1 + $0x248] sm:$0xff]  ;;  %v132_v36 = vld [vmem:[%s821_s1 + $0x2c0] sm:$0xff]  ;;  %v115_v39 = vld [vmem:[%s821_s1 + $0x238] sm:$0xff] }
  0x1e   :  { %430 = vmatprep.subr.mxu1 %v94_v58  ;;  %396 = vmatpush3.msra.mxu0 %v46_v61  ;;  %v116_v37 = vld [vmem:[%s821_s1 + $0x240] sm:$0xff]  ;;  %v130_v40 = vld [vmem:[%s821_s1 + $0x2b0] sm:$0xff]  ;;  %v129_v42 = vld [vmem:[%s821_s1 + $0x2a8] sm:$0xff] }
  0x1f   :  { %431 = vmatpush3.msra.mxu1 %v78_v62  ;;  %397 = vmatprep.subr.mxu0 %v61_v63  ;;  %v34_v28 = vadd.f32 %v33_v25, %v29_v22  ;;  %v114_v41 = vld [vmem:[%s821_s1 + $0x230] sm:$0xff]  ;;  %v113_v43 = vld [vmem:[%s821_s1 + $0x228] sm:$0xff]  ;;  %v128_v44 = vld [vmem:[%s821_s1 + $0x2a0] sm:$0xff] }
  0x20   :  { %432 = vmatprep.subr.mxu1 %v93_v0  ;;  %398 = vmatpush3.msra.mxu0 %v45_v2  ;;  %v112_v45 = vld [vmem:[%s821_s1 + $0x220] sm:$0xff]  ;;  %v127_v46 = vld [vmem:[%s821_s1 + $0x298] sm:$0xff]  ;;  %v126_v48 = vld [vmem:[%s821_s1 + $0x290] sm:$0xff]  ;;  %v351_v0 = vstv %s823_s3 }
  0x21   :  { %433 = vmatpush3.msra.mxu1 %v77_v3  ;;  %399 = vmatprep.subr.mxu0 %v60_v4  ;;  %v111_v47 = vld [vmem:[%s821_s1 + $0x218] sm:$0xff]  ;;  %v110_v49 = vld [vmem:[%s821_s1 + $0x210] sm:$0xff]  ;;  %v125_v50 = vld [vmem:[%s821_s1 + $0x288] sm:$0xff] }
  0x22   :  { %434 = vmatprep.subr.mxu1 %v92_v5  ;;  %400 = vmatpush3.msra.mxu0 %v44_v9  ;;  %v109_v51 = vld [vmem:[%s821_s1 + $0x208] sm:$0xff]  ;;  %v124_v52 = vld [vmem:[%s821_s1 + $0x280] sm:$0xff] }
  0x23   :  { %204 = vmatprep.mubr.f32.mxu0 %v39_v6  ;;  %435 = vmatpush3.msra.mxu1 %v76_v11  ;;  %v108_v53 = vld [vmem:[%s821_s1 + $0x200] sm:$0xff] }
  0x24   :  { %274 = vmatprep.mubr.f32.mxu1 %v41_v10  ;;  %205 = vmatmul.mubr.f32.vlgmr.msra.gmra.mxu0 %v38_v12  ;;  %v368_v6 = vld [vmem:[%s824_s2] ss:$0 sm:$0xff] }
  0x25   :  { %275 = vmatmul.mubr.f32.vlgmr.msra.gmra.mxu1 %v40_v13  ;;  %439 = vmatprep.subr.mxu0 %v139_v14 }
  0x26   :  { %440 = vmatpush3.msra.mxu0 %v123_v16  ;;  %344 = vmatprep.mubr.f32.mxu0 %v43_v20 }
  0x27   :  { %441 = vmatprep.subr.mxu0 %v138_v19  ;;  %35 = vadd.xlane.f32.xlu0 %v34_v28 }
  0x28   :  { %442 = vmatpush3.msra.mxu0 %v122_v23 }
  0x29   :  { %443 = vmatprep.subr.mxu0 %v137_v24 }
  0x2a   :  { %444 = vmatpush3.msra.mxu0 %v121_v26 }
  0x2b   :  { %445 = vmatprep.subr.mxu0 %v136_v27 }
  0x2c   :  { %446 = vmatpush3.msra.mxu0 %v120_v29 }
  0x2d   :  { %447 = vmatprep.subr.mxu0 %v135_v30 }
  0x2e   :  { %448 = vmatpush3.msra.mxu0 %v119_v31 }
  0x2f   :  { %449 = vmatprep.subr.mxu0 %v134_v32 }
  0x30   :  { %450 = vmatpush3.msra.mxu0 %v118_v33 }
  0x31   :  { %451 = vmatprep.subr.mxu0 %v133_v34 }
  0x32   :  { %452 = vmatpush3.msra.mxu0 %v117_v35 }
  0x33   :  { %453 = vmatprep.subr.mxu0 %v132_v36 }
  0x34   :  { %454 = vmatpush3.msra.mxu0 %v116_v37 }
  0x35   :  { %455 = vmatprep.subr.mxu0 %v131_v38 }
  0x36   :  { %456 = vmatpush3.msra.mxu0 %v115_v39 }
  0x37   :  { %457 = vmatprep.subr.mxu0 %v130_v40 }
  0x38   :  { %458 = vmatpush3.msra.mxu0 %v114_v41 }
  0x39   :  { %459 = vmatprep.subr.mxu0 %v129_v42 }
  0x3a   :  { %460 = vmatpush3.msra.mxu0 %v113_v43 }
  0x3b   :  { %461 = vmatprep.subr.mxu0 %v128_v44 }
  0x3c   :  { %462 = vmatpush3.msra.mxu0 %v112_v45 }
  0x3d   :  { %463 = vmatprep.subr.mxu0 %v127_v46 }
  0x3e   :  { %464 = vmatpush3.msra.mxu0 %v111_v47 }
  0x3f   :  { %465 = vmatprep.subr.mxu0 %v126_v48 }
  0x40   :  { %466 = vmatpush3.msra.mxu0 %v110_v49 }
  0x41   :  { %467 = vmatprep.subr.mxu0 %v125_v50 }
  0x42   :  { %468 = vmatpush3.msra.mxu0 %v109_v51 }
  0x43   :  { %469 = vmatprep.subr.mxu0 %v124_v52 }
  0x44   :  { %470 = vmatpush3.msra.mxu0 %v108_v53 }
  0x45   :  { %345 = vmatmul.mubr.f32.vlgmr.msra.gmra.mxu0 %v42_v54 }
  0xb0   :  { %v36_v55 = vpop.xlane.xlu0 %35 }
  0xb1   :  { %474 = vrsqrt.f32 %v36_v55 }
  0xbe   :  { %v475_v62 = vpop.eup %474 }
  0xbf   :  { %v352_v4 = vmul.f32 %v475_v62, %v351_v0 }
  0xe4   :  { %v401_v56 = vpop.f32.mrf.mxu0 }
  0xe5   :  { %v436_v57 = vpop.f32.mrf.mxu1 }
  0xe6   :  { %v402_v58 = vpop.f32.mrf.mxu0 }
  0xe7   :  { %v437_v59 = vpop.f32.mrf.mxu1  ;;  %v403_v60 = vadd.f32 %v402_v58, %v401_v56 }
  0xe8   :  { %v438_v61 = vadd.f32 %v437_v59, %v436_v57 }
  0xea   :  { %v277_v2 = vadd.f32 %v438_v61, %v403_v60 }
 0x105   :  { %v471_v63 = vpop.f32.mrf.mxu0 }
 0x107   :  { %v472_v1 = vpop.f32.mrf.mxu0 }
 0x108   :  { %v473_v3 = vadd.f32 %v472_v1, %v471_v63 }
 0x10a   :  { %v347_v5 = vadd.f32 %v473_v3, %v277_v2 }
 0x10c   :  { %v353_v7 = vmul.f32 %v352_v4, %v347_v5 }
 0x10e   :  { %v361_v8 = vadd.f32 %v368_v6, %v353_v7 }
 0x110   :  { %363 = vst.msk [vmem:[%s825_s4] sm:$0xff] %vm362_vm0, %v361_v8 }

</bundles_post_ra>
